<compile_context>
chip_gen: v5e
topology: v5e:2x2
jax: 0.10.0
libtpu: 0.0.40
codegen_flags: <defaults>
</compile_context>

<pallas_src>
import jax
import jax.numpy as jnp
from jax.experimental import pallas as pl
from jax.experimental.pallas import tpu as pltpu

_SELU_ALPHA = 1.6732632423543772
_SELU_SCALE = 1.0507009873554805


def _round_up(x, m):
    return ((x + m - 1) // m) * m


def _selu_unscaled(v):
    """SELU without its output scale (the scale is folded into the next
    layer's weights at init).  exp(min(v, 0)) keeps the untaken branch finite
    for large positive v."""
    neg = _SELU_ALPHA * jnp.exp(jnp.minimum(v, 0.0)) - _SELU_ALPHA
    return jnp.where(v > 0, v, neg)


def actor_kernel(x_ref,
                 w1_ref, b1_ref,
                 w2_ref, b2_ref,
                 w3_ref, b3_ref,
                 w4_ref, b4_ref,
                 out_ref):
    """Whole actor MLP: 4 bf16 MXU matmuls (f32 accumulation) + SELU + tanh."""
    cdt = w1_ref.dtype            # MXU operand dtype (bf16 by default)
    n_out = out_ref.shape[1]      # true number of actions (un-padded)

    x = x_ref[...].astype(cdt)    # f32 -> bf16 cast happens in VMEM (no XLA pass)
    h = _selu_unscaled(jnp.dot(x, w1_ref[...],
                               preferred_element_type=jnp.float32) + b1_ref[...])
    h = _selu_unscaled(jnp.dot(h.astype(cdt), w2_ref[...],
                               preferred_element_type=jnp.float32) + b2_ref[...])
    h = _selu_unscaled(jnp.dot(h.astype(cdt), w3_ref[...],
                               preferred_element_type=jnp.float32) + b3_ref[...])
    z = jnp.dot(h.astype(cdt), w4_ref[...],
                preferred_element_type=jnp.float32) + b4_ref[...]
    # Only the real action lanes are stored: (tile, n_actions) f32.
    out_ref[...] = jnp.tanh(z[:, :n_out]).astype(out_ref.dtype)


def _choose_tile(B, batch_tile):
    """Batch tile: whole batch when tiny (block == full array); otherwise at
    least two grid steps (so the "parallel" batch axis shards across both
    TensorCores on v7x), capped at `batch_tile` rows."""
    if _round_up(B, 16) <= 128:
        return B
    half = _round_up((_round_up(B, 16) + 1) // 2, 16)
    return min(batch_tile, half)


def actor_forward(state, params, *, n_actions=2, batch_tile=1024):
    """Wrapper: no padding/slicing passes — Pallas masks the partial edge block."""
    (w1, b1), (w2, b2), (w3, b3), (w4, b4) = params
    B, F_in = state.shape

    tile = _choose_tile(B, _round_up(batch_tile, 16))
    grid = (pl.cdiv(B, tile),)

    def x_map(i):
        return (i, 0)

    def param_map(i):
        return (0, 0)

    in_specs = [
        pl.BlockSpec((tile, F_in), x_map),
        pl.BlockSpec(w1.shape, param_map), pl.BlockSpec(b1.shape, param_map),
        pl.BlockSpec(w2.shape, param_map), pl.BlockSpec(b2.shape, param_map),
        pl.BlockSpec(w3.shape, param_map), pl.BlockSpec(b3.shape, param_map),
        pl.BlockSpec(w4.shape, param_map), pl.BlockSpec(b4.shape, param_map),
    ]
    out_spec = pl.BlockSpec((tile, n_actions), x_map)

    return pl.pallas_call(
        actor_kernel,
        out_shape=jax.ShapeDtypeStruct((B, n_actions), jnp.float32),
        grid_spec=pltpu.PrefetchScalarGridSpec(
            num_scalar_prefetch=0,
            grid=grid,
            in_specs=in_specs,
            out_specs=out_spec,
        ),
        compiler_params=pltpu.CompilerParams(
            dimension_semantics=("parallel",),
            vmem_limit_bytes=32 * 1024 * 1024),
    )(state, w1, b1, w2, b2, w3, b3, w4, b4)


def init_actor_params(key, n_states=24, n_actions=2, n_hidden=256,
                      weight_dtype=jnp.bfloat16):
    """PyTorch-nn.Linear-style uniform init, stored as (in, out).

    * Hidden/output widths zero-padded to multiples of 128 lanes; selu(0) = 0
      and zero weight rows/cols keep the padding numerically transparent.
    * The SELU output scale of each hidden layer is folded into the *next*
      layer's weights (biases unchanged), so the kernel applies the unscaled
      SELU.
    * Weights stored in `weight_dtype` (bf16), biases kept in f32.
    """
    dims = [n_states, n_hidden, n_hidden // 2, n_hidden // 4, n_actions]
    padded = [n_states] + [_round_up(d, 128) for d in dims[1:]]
    params = []
    for i in range(4):
        fan_in, fan_out = dims[i], dims[i + 1]
        in_p, out_p = padded[i], padded[i + 1]
        key, kw, kb = jax.random.split(key, 3)
        bound = fan_in ** -0.5
        w = jax.random.uniform(kw, (fan_in, fan_out), jnp.float32, -bound, bound)
        b = jax.random.uniform(kb, (1, fan_out), jnp.float32, -bound, bound)
        if i > 0:
            # Fold the previous layer's SELU output scale into this layer.
            w = w * _SELU_SCALE
        w_pad = jnp.zeros((in_p, out_p), jnp.float32).at[:fan_in, :fan_out].set(w)
        b_pad = jnp.zeros((1, out_p), jnp.float32).at[:, :fan_out].set(b)
        params.append((w_pad.astype(weight_dtype), b_pad))
    return params


def actor_reference(state, params, *, n_actions=2):
    """Pure-JAX reference with the same numeric path (bf16 operands, f32 acc,
    scale-folded weights)."""
    (w1, b1), (w2, b2), (w3, b3), (w4, b4) = params
    cdt = w1.dtype
    h = _selu_unscaled(jnp.dot(state.astype(cdt), w1,
                               preferred_element_type=jnp.float32) + b1)
    h = _selu_unscaled(jnp.dot(h.astype(cdt), w2,
                               preferred_element_type=jnp.float32) + b2)
    h = _selu_unscaled(jnp.dot(h.astype(cdt), w3,
                               preferred_element_type=jnp.float32) + b3)
    z = jnp.dot(h.astype(cdt), w4, preferred_element_type=jnp.float32) + b4
    return jnp.tanh(z)[:, :n_actions]


if __name__ == "__main__":
    n_states, n_actions, n_hidden = 24, 2, 256

    key = jax.random.PRNGKey(0)
    k_params, k1, k2, k3 = jax.random.split(key, 4)
    params = init_actor_params(k_params, n_states, n_actions, n_hidden)

    # Tiny batch: single grid step, block == full array.
    s1 = jax.random.normal(k1, (8, n_states), jnp.float32)
    o1 = jax.block_until_ready(actor_forward(s1, params, n_actions=n_actions))
    r1 = actor_reference(s1, params, n_actions=n_actions)
    assert o1.shape == (8, n_actions)
    assert jnp.allclose(o1, r1, atol=2e-3, rtol=2e-3), "tiny-batch mismatch"

    # Mid-size, non-multiple batch: two 256-row grid steps (dual-TC path on
    # v7x) with a masked partial edge block.
    s2 = jax.random.normal(k2, (500, n_states), jnp.float32)
    o2 = jax.block_until_ready(actor_forward(s2, params, n_actions=n_actions))
    r2 = actor_reference(s2, params, n_actions=n_actions)
    assert o2.shape == (500, n_actions)
    assert jnp.allclose(o2, r2, atol=2e-3, rtol=2e-3), "mid-batch mismatch"

    # Large batch: exercises the capped 1024-row tile and a partial last block.
    s3 = jax.random.normal(k3, (2500, n_states), jnp.float32)
    o3 = jax.block_until_ready(actor_forward(s3, params, n_actions=n_actions))
    r3 = actor_reference(s3, params, n_actions=n_actions)
    assert o3.shape == (2500, n_actions)
    assert jnp.allclose(o3, r3, atol=2e-3, rtol=2e-3), "large-batch mismatch"

    print("KERNEL_OK")
</pallas_src>

<mosaic_0001>
module attributes {stable_mosaic.version = 11 : i64} {
  func.func @actor_kernel(%arg0: i32, %arg1: memref<8x24xf32, #tpu.memory_space<vmem>>, %arg2: memref<24x256xbf16, #tpu.memory_space<vmem>>, %arg3: memref<1x256xf32, #tpu.memory_space<vmem>>, %arg4: memref<256x128xbf16, #tpu.memory_space<vmem>>, %arg5: memref<1x128xf32, #tpu.memory_space<vmem>>, %arg6: memref<128x128xbf16, #tpu.memory_space<vmem>>, %arg7: memref<1x128xf32, #tpu.memory_space<vmem>>, %arg8: memref<128x128xbf16, #tpu.memory_space<vmem>>, %arg9: memref<1x128xf32, #tpu.memory_space<vmem>>, %arg10: memref<8x2xf32, #tpu.memory_space<vmem>>) attributes {dimension_semantics = [#tpu.dimension_semantics<parallel>], iteration_bounds = array<i64: 1>, scalar_prefetch = 0 : i64, scratch_operands = 0 : i64, tpu.core_type = #tpu.core_type<tc>, window_params = [{transform_indices = @transform_0, window_bounds = array<i64: 8, 24>}, {pipeline_mode = #tpu.pipeline_mode<synchronous>, transform_indices = @transform_1, window_bounds = array<i64: 24, 256>}, {pipeline_mode = #tpu.pipeline_mode<synchronous>, transform_indices = @transform_2, window_bounds = array<i64: 1, 256>}, {pipeline_mode = #tpu.pipeline_mode<synchronous>, transform_indices = @transform_3, window_bounds = array<i64: 256, 128>}, {pipeline_mode = #tpu.pipeline_mode<synchronous>, transform_indices = @transform_4, window_bounds = array<i64: 1, 128>}, {pipeline_mode = #tpu.pipeline_mode<synchronous>, transform_indices = @transform_5, window_bounds = array<i64: 128, 128>}, {pipeline_mode = #tpu.pipeline_mode<synchronous>, transform_indices = @transform_6, window_bounds = array<i64: 1, 128>}, {pipeline_mode = #tpu.pipeline_mode<synchronous>, transform_indices = @transform_7, window_bounds = array<i64: 128, 128>}, {pipeline_mode = #tpu.pipeline_mode<synchronous>, transform_indices = @transform_8, window_bounds = array<i64: 1, 128>}, {transform_indices = @transform_9, window_bounds = array<i64: 8, 2>}]} {
    %c0 = arith.constant 0 : index
    %c0_0 = arith.constant 0 : index
    %0 = vector.load %arg1[%c0, %c0_0] : memref<8x24xf32, #tpu.memory_space<vmem>>, vector<8x24xf32>
    %1 = arith.truncf %0 : vector<8x24xf32> to vector<8x24xbf16>
    %c0_1 = arith.constant 0 : index
    %c0_2 = arith.constant 0 : index
    %2 = vector.load %arg2[%c0_1, %c0_2] : memref<24x256xbf16, #tpu.memory_space<vmem>>, vector<24x256xbf16>
    %cst = arith.constant dense<0.000000e+00> : vector<8x256xf32>
    %3 = tpu.matmul %1, %2, %cst {dimension_numbers = #tpu.dot_dimension_numbers<[1], [0], [0], [1], [0, 0, 1, 1], [], []>} : vector<8x24xbf16>, vector<24x256xbf16>, vector<8x256xf32> -> vector<8x256xf32>
    %c0_3 = arith.constant 0 : index
    %c0_4 = arith.constant 0 : index
    %4 = vector.load %arg3[%c0_3, %c0_4] : memref<1x256xf32, #tpu.memory_space<vmem>>, vector<1x256xf32>
    %5 = vector.broadcast %4 : vector<1x256xf32> to vector<8x256xf32>
    %6 = arith.addf %3, %5 : vector<8x256xf32>
    %cst_5 = arith.constant 0.000000e+00 : f32
    %7 = vector.broadcast %cst_5 : f32 to vector<8x256xf32>
    %8 = arith.minimumf %6, %7 : vector<8x256xf32>
    %9 = math.exp %8 : vector<8x256xf32>
    %cst_6 = arith.constant 1.67326319 : f32
    %10 = vector.broadcast %cst_6 : f32 to vector<8x256xf32>
    %11 = arith.mulf %10, %9 : vector<8x256xf32>
    %cst_7 = arith.constant 1.67326319 : f32
    %12 = vector.broadcast %cst_7 : f32 to vector<8x256xf32>
    %13 = arith.subf %11, %12 : vector<8x256xf32>
    %cst_8 = arith.constant 0.000000e+00 : f32
    %14 = vector.broadcast %cst_8 : f32 to vector<8x256xf32>
    %15 = arith.cmpf ogt, %6, %14 : vector<8x256xf32>
    %16 = arith.select %15, %6, %13 : vector<8x256xi1>, vector<8x256xf32>
    %17 = arith.truncf %16 : vector<8x256xf32> to vector<8x256xbf16>
    %c0_9 = arith.constant 0 : index
    %c0_10 = arith.constant 0 : index
    %18 = vector.load %arg4[%c0_9, %c0_10] : memref<256x128xbf16, #tpu.memory_space<vmem>>, vector<256x128xbf16>
    %cst_11 = arith.constant dense<0.000000e+00> : vector<8x128xf32>
    %19 = tpu.matmul %17, %18, %cst_11 {dimension_numbers = #tpu.dot_dimension_numbers<[1], [0], [0], [1], [0, 0, 1, 1], [], []>} : vector<8x256xbf16>, vector<256x128xbf16>, vector<8x128xf32> -> vector<8x128xf32>
    %c0_12 = arith.constant 0 : index
    %c0_13 = arith.constant 0 : index
    %20 = vector.load %arg5[%c0_12, %c0_13] : memref<1x128xf32, #tpu.memory_space<vmem>>, vector<1x128xf32>
    %21 = vector.broadcast %20 : vector<1x128xf32> to vector<8x128xf32>
    %22 = arith.addf %19, %21 : vector<8x128xf32>
    %cst_14 = arith.constant 0.000000e+00 : f32
    %23 = vector.broadcast %cst_14 : f32 to vector<8x128xf32>
    %24 = arith.minimumf %22, %23 : vector<8x128xf32>
    %25 = math.exp %24 : vector<8x128xf32>
    %cst_15 = arith.constant 1.67326319 : f32
    %26 = vector.broadcast %cst_15 : f32 to vector<8x128xf32>
    %27 = arith.mulf %26, %25 : vector<8x128xf32>
    %cst_16 = arith.constant 1.67326319 : f32
    %28 = vector.broadcast %cst_16 : f32 to vector<8x128xf32>
    %29 = arith.subf %27, %28 : vector<8x128xf32>
    %cst_17 = arith.constant 0.000000e+00 : f32
    %30 = vector.broadcast %cst_17 : f32 to vector<8x128xf32>
    %31 = arith.cmpf ogt, %22, %30 : vector<8x128xf32>
    %32 = arith.select %31, %22, %29 : vector<8x128xi1>, vector<8x128xf32>
    %33 = arith.truncf %32 : vector<8x128xf32> to vector<8x128xbf16>
    %c0_18 = arith.constant 0 : index
    %c0_19 = arith.constant 0 : index
    %34 = vector.load %arg6[%c0_18, %c0_19] : memref<128x128xbf16, #tpu.memory_space<vmem>>, vector<128x128xbf16>
    %cst_20 = arith.constant dense<0.000000e+00> : vector<8x128xf32>
    %35 = tpu.matmul %33, %34, %cst_20 {dimension_numbers = #tpu.dot_dimension_numbers<[1], [0], [0], [1], [0, 0, 1, 1], [], []>} : vector<8x128xbf16>, vector<128x128xbf16>, vector<8x128xf32> -> vector<8x128xf32>
    %c0_21 = arith.constant 0 : index
    %c0_22 = arith.constant 0 : index
    %36 = vector.load %arg7[%c0_21, %c0_22] : memref<1x128xf32, #tpu.memory_space<vmem>>, vector<1x128xf32>
    %37 = vector.broadcast %36 : vector<1x128xf32> to vector<8x128xf32>
    %38 = arith.addf %35, %37 : vector<8x128xf32>
    %cst_23 = arith.constant 0.000000e+00 : f32
    %39 = vector.broadcast %cst_23 : f32 to vector<8x128xf32>
    %40 = arith.minimumf %38, %39 : vector<8x128xf32>
    %41 = math.exp %40 : vector<8x128xf32>
    %cst_24 = arith.constant 1.67326319 : f32
    %42 = vector.broadcast %cst_24 : f32 to vector<8x128xf32>
    %43 = arith.mulf %42, %41 : vector<8x128xf32>
    %cst_25 = arith.constant 1.67326319 : f32
    %44 = vector.broadcast %cst_25 : f32 to vector<8x128xf32>
    %45 = arith.subf %43, %44 : vector<8x128xf32>
    %cst_26 = arith.constant 0.000000e+00 : f32
    %46 = vector.broadcast %cst_26 : f32 to vector<8x128xf32>
    %47 = arith.cmpf ogt, %38, %46 : vector<8x128xf32>
    %48 = arith.select %47, %38, %45 : vector<8x128xi1>, vector<8x128xf32>
    %49 = arith.truncf %48 : vector<8x128xf32> to vector<8x128xbf16>
    %c0_27 = arith.constant 0 : index
    %c0_28 = arith.constant 0 : index
    %50 = vector.load %arg8[%c0_27, %c0_28] : memref<128x128xbf16, #tpu.memory_space<vmem>>, vector<128x128xbf16>
    %cst_29 = arith.constant dense<0.000000e+00> : vector<8x128xf32>
    %51 = tpu.matmul %49, %50, %cst_29 {dimension_numbers = #tpu.dot_dimension_numbers<[1], [0], [0], [1], [0, 0, 1, 1], [], []>} : vector<8x128xbf16>, vector<128x128xbf16>, vector<8x128xf32> -> vector<8x128xf32>
    %c0_30 = arith.constant 0 : index
    %c0_31 = arith.constant 0 : index
    %52 = vector.load %arg9[%c0_30, %c0_31] : memref<1x128xf32, #tpu.memory_space<vmem>>, vector<1x128xf32>
    %53 = vector.broadcast %52 : vector<1x128xf32> to vector<8x128xf32>
    %54 = arith.addf %51, %53 : vector<8x128xf32>
    %55 = vector.extract_strided_slice %54 {offsets = [0, 0], sizes = [8, 2], strides = [1, 1]} : vector<8x128xf32> to vector<8x2xf32>
    %56 = math.tanh %55 : vector<8x2xf32>
    %c0_32 = arith.constant 0 : index
    %c0_33 = arith.constant 0 : index
    %57 = vector.load %arg10[%c0_32, %c0_33] : memref<8x2xf32, #tpu.memory_space<vmem>>, vector<8x2xf32>
    tpu.vector_store %arg10[%c0_32, %c0_33], %56 {strides = array<i32>} : memref<8x2xf32, #tpu.memory_space<vmem>>, vector<8x2xf32>,
    return
  }
  func.func @transform_0(%arg0: i32) -> (i32, i32) {
    %c0_i32 = arith.constant 0 : i32
    %c0_i32_0 = arith.constant 0 : i32
    return %arg0, %c0_i32 : i32, i32
  }
  func.func @transform_1(%arg0: i32) -> (i32, i32) {
    %c0_i32 = arith.constant 0 : i32
    %c0_i32_0 = arith.constant 0 : i32
    %c0_i32_1 = arith.constant 0 : i32
    return %c0_i32, %c0_i32_0 : i32, i32
  }
  func.func @transform_2(%arg0: i32) -> (i32, i32) {
    %c0_i32 = arith.constant 0 : i32
    %c0_i32_0 = arith.constant 0 : i32
    %c0_i32_1 = arith.constant 0 : i32
    return %c0_i32, %c0_i32_0 : i32, i32
  }
  func.func @transform_3(%arg0: i32) -> (i32, i32) {
    %c0_i32 = arith.constant 0 : i32
    %c0_i32_0 = arith.constant 0 : i32
    %c0_i32_1 = arith.constant 0 : i32
    return %c0_i32, %c0_i32_0 : i32, i32
  }
  func.func @transform_4(%arg0: i32) -> (i32, i32) {
    %c0_i32 = arith.constant 0 : i32
    %c0_i32_0 = arith.constant 0 : i32
    %c0_i32_1 = arith.constant 0 : i32
    return %c0_i32, %c0_i32_0 : i32, i32
  }
  func.func @transform_5(%arg0: i32) -> (i32, i32) {
    %c0_i32 = arith.constant 0 : i32
    %c0_i32_0 = arith.constant 0 : i32
    %c0_i32_1 = arith.constant 0 : i32
    return %c0_i32, %c0_i32_0 : i32, i32
  }
  func.func @transform_6(%arg0: i32) -> (i32, i32) {
    %c0_i32 = arith.constant 0 : i32
    %c0_i32_0 = arith.constant 0 : i32
    %c0_i32_1 = arith.constant 0 : i32
    return %c0_i32, %c0_i32_0 : i32, i32
  }
  func.func @transform_7(%arg0: i32) -> (i32, i32) {
    %c0_i32 = arith.constant 0 : i32
    %c0_i32_0 = arith.constant 0 : i32
    %c0_i32_1 = arith.constant 0 : i32
    return %c0_i32, %c0_i32_0 : i32, i32
  }
  func.func @transform_8(%arg0: i32) -> (i32, i32) {
    %c0_i32 = arith.constant 0 : i32
    %c0_i32_0 = arith.constant 0 : i32
    %c0_i32_1 = arith.constant 0 : i32
    return %c0_i32, %c0_i32_0 : i32, i32
  }
  func.func @transform_9(%arg0: i32) -> (i32, i32) {
    %c0_i32 = arith.constant 0 : i32
    %c0_i32_0 = arith.constant 0 : i32
    return %arg0, %c0_i32 : i32, i32
  }
}

</mosaic_0001>

<bundles_post_ra>
// kernel: tpu_custom_call.1
= control target key start
LH: loop header
LB: loop body
LE: loop exit
PB: predicated region body
PF: predicated region fallthrough
CT: control target
= control target key end

     0   :  { %14 = vsyncpa [#allocation3], 0  ;;  %s990_s0 = inlined_call_operand.hbm [shape: f32[8,24], index: 0, kind: input, shape index: {}]   ;;  %s991_s1 = inlined_call_operand.hbm [shape: bf16[24,256], index: 1, kind: input, shape index: {}]   ;;  %s992_s2 = inlined_call_operand.hbm [shape: f32[1,256], index: 2, kind: input, shape index: {}]   ;;  %s993_s3 = inlined_call_operand.hbm [shape: bf16[256,128], index: 3, kind: input, shape index: {}]   ;;  %s994_s4 = inlined_call_operand.vmem [shape: f32[1,128], index: 4, kind: input, shape index: {}]   ;;  %s995_s5 = inlined_call_operand.hbm [shape: bf16[128,128], index: 5, kind: input, shape index: {}]   ;;  %s996_s6 = inlined_call_operand.vmem [shape: f32[1,128], index: 6, kind: input, shape index: {}]   ;;  %s997_s7 = inlined_call_operand.hbm [shape: bf16[128,128], index: 7, kind: input, shape index: {}]   ;;  %s998_s8 = inlined_call_operand.vmem [shape: f32[1,128], index: 8, kind: input, shape index: {}]   ;;  %s999_s9 = inlined_call_operand.vmem [shape: f32[8,2], index: 9, kind: output, shape index: {}]  }
   0x1   :  { %15 = vsyncpa [#allocation5], 0 }
   0x2   :  { %16 = vsyncpa [#allocation8], 0  ;;  %s33_s11 = sshll.u32 %s991_s1, 4  ;;  %s34_s11 = int_to_ptr.hbm [resolvable:$true] %s33_s11 }
   0x3   :  { %17 = vsyncpa [#allocation11], 0  ;;  %s900_s12 = smov [#allocation4]   ;;  %s57_s16 = sshll.u32 %s993_s3, 4  ;;  %s58_s16 = int_to_ptr.hbm [resolvable:$true] %s57_s16 }
   0x4   :  { %s35_s13 = sshll.u32 %s900_s12, 4  ;;  %s901_s17 = smov 128   ;;  %s36_s13 = int_to_ptr.vmem [resolvable:$true] %s35_s13 }
   0x5   :  { %s902_s18 = smov 8   ;;  %s903_s19 = smov [#allocation7]  }
   0x6   :  { %41 = dma.hbm_to_vmem [thread:$0]  %s34_s11, 384, %s36_s13, [#allocation5], %s901_s17, %s901_s17, %s902_s18  }
   0x7   :  { %s59_s20 = sshll.u32 %s903_s19, 4  ;;  %s904_s21 = smov 64   ;;  %s60_s20 = int_to_ptr.vmem [resolvable:$true] %s59_s20 }
   0x8   :  { %s905_s22 = smov 4   ;;  %s23_s24 = sshll.u32 %s990_s0, 4  ;;  %s24_s24 = int_to_ptr.hbm [resolvable:$true] %s23_s24 }
   0x9   :  { %65 = dma.hbm_to_vmem [thread:$0]  %s58_s16, 2048, %s60_s20, [#allocation8], %s904_s21, %s904_s21, %s905_s22  }
   0xa   :  { %s906_s25 = smov [#allocation2]   ;;  %s47_s28 = sshll.u32 %s992_s2, 4  ;;  %s48_s28 = int_to_ptr.hbm [resolvable:$true] %s47_s28 }
   0xb   :  { %s25_s26 = sshll.u32 %s906_s25, 4  ;;  %s907_s29 = smov [#allocation6]   ;;  %s26_s26 = int_to_ptr.vmem [resolvable:$true] %s25_s26 }
   0xc   :  { %28 = dma.hbm_to_vmem [thread:$0]  %s24_s24, 128, %s26_s26, [#allocation3]  }
   0xd   :  { %s49_s30 = sshll.u32 %s907_s29, 4  ;;  %s72_s12 = sshll.u32 %s995_s5, 4  ;;  %s50_s30 = int_to_ptr.vmem [resolvable:$true] %s49_s30  ;;  %s73_s12 = int_to_ptr.hbm [resolvable:$true] %s72_s12 }
   0xe   :  { %52 = dma.hbm_to_vmem [thread:$0]  %s48_s28, 32, %s50_s30, [#allocation5]  }
   0xf   :  { %s87_s14 = sshll.u32 %s997_s7, 4  ;;  %s908_s15 = smov [#allocation9]   ;;  %s88_s14 = int_to_ptr.hbm [resolvable:$true] %s87_s14 }
  0x10   :  { %s74_s16 = sshll.u32 %s908_s15, 4  ;;  %s909_s2 = smov [#allocation10]   ;;  %s75_s16 = int_to_ptr.vmem [resolvable:$true] %s74_s16 }
  0x11   :  { %80 = dma.hbm_to_vmem [thread:$0]  %s73_s12, 1024, %s75_s16, [#allocation8], %s904_s21, %s904_s21, %s905_s22  }
  0x12   :  { %s89_s17 = sshll.u32 %s909_s2, 4  ;;  %s90_s17 = int_to_ptr.vmem [resolvable:$true] %s89_s17 }
  0x13   :  { %95 = dma.hbm_to_vmem [thread:$0]  %s88_s14, 1024, %s90_s17, [#allocation11], %s904_s21, %s904_s21, %s905_s22  }
  0x14   :  { %892 = dma.done.wait [#allocation3], 128  }
  0x15   :  { %893 = vsyncadd [#allocation3], 4294967168 }
  0x16   :  { %894 = dma.done.wait [#allocation5], 416  }
  0x17   :  { %895 = vsyncadd [#allocation5], 4294966880 }
  0x18   :  { %896 = dma.done.wait [#allocation8], 3072  }
  0x19   :  { %897 = vsyncadd [#allocation8], 4294964224 }
  0x1a   :  { %898 = dma.done.wait [#allocation11], 1024  }
  0x1b   :  { %899 = vsyncadd [#allocation11], 4294966272  ;;  %v127_v0 = vld [vmem:[#allocation4 + $0x10] sm:$0xff]  ;;  %v551_v3 = vld [vmem:[#allocation4] sm:$0xf]  ;;  %vm153_vm0 = vcmask 1043456  }
  0x1c   :  { %v141_v1 = vunpack.c.l.b16 %v127_v0  ;;  %v142_v2 = vunpack.c.h.b16 %v127_v0  ;;  %v692_v4 = vld [vmem:[#allocation4 + $0x4] sm:$0xf0]  ;;  %v700_v5 = vld [vmem:[#allocation7 + $0x38] sm:$0xff]  ;;  %v691_v9 = vld [vmem:[#allocation4 + $0x4] sm:$0xf]  ;;  %vm149_vm1 = vcmask 195584  }
  0x1d   :  { %v708_v6 = vld [vmem:[#allocation7 + $0x78] sm:$0xff]  ;;  %v553_v10 = vld [vmem:[#allocation4 + $0x8] sm:$0xf0]  ;;  %334 = vmatpush.bf16.msra.mxu2 %v700_v5  ;;  %v552_v15 = vor.u32 %v692_v4, %v551_v3  ;;  %v698_v18 = vld [vmem:[#allocation7 + $0x28] sm:$0xff]  ;;  %vm539_vm6 = vcmask 15360  }
  0x1e   :  { %v145_v7 = vpack.c.b16 %v141_v1, %v141_v1  ;;  %v146_v8 = vpack.c.b16 %v142_v2, %v142_v2  ;;  %v699_v11 = vld [vmem:[#allocation7 + $0x30] sm:$0xff]  ;;  %347 = vmatpush.bf16.msra.mxu3 %v708_v6  ;;  %v556_v16 = vor.u32 %v691_v9, %v553_v10  ;;  %v123_v17 = vld [vmem:[#allocation2] sm:$0xff]  ;;  %v706_v19 = vld [vmem:[#allocation7 + $0x68] sm:$0xff] }
  0x1f   :  { %v707_v12 = vld [vmem:[#allocation7 + $0x70] sm:$0xff]  ;;  %v124_v20 = vpack.c.bf16 %v123_v17, %v123_v17  ;;  %v697_v21 = vld [vmem:[#allocation7 + $0x20] sm:$0xff]  ;;  %v696_v23 = vld [vmem:[#allocation7 + $0x18] sm:$0xff] }
  0x20   :  { %v155_v13 = vsel %vm153_vm0, %v145_v7, 0  ;;  %v158_v14 = vsel %vm153_vm0, %v146_v8, 0  ;;  %v705_v22 = vld [vmem:[#allocation7 + $0x60] sm:$0xff]  ;;  %v704_v24 = vld [vmem:[#allocation7 + $0x58] sm:$0xff]  ;;  %v695_v25 = vld [vmem:[#allocation7 + $0x10] sm:$0xff] }
  0x21   :  { %166 = vmatpush.bf16.msra.mxu0 %v155_v13  ;;  %179 = vmatpush.bf16.msra.mxu1 %v158_v14  ;;  %v703_v26 = vld [vmem:[#allocation7 + $0x50] sm:$0xff]  ;;  %v694_v27 = vld [vmem:[#allocation7 + $0x8] sm:$0xff]  ;;  %v693_v29 = vld [vmem:[#allocation7] sm:$0xff] }
  0x22   :  { %335 = vmatpush.bf16.msra.mxu2 %v699_v11  ;;  %348 = vmatpush.bf16.msra.mxu3 %v707_v12  ;;  %v702_v28 = vld [vmem:[#allocation7 + $0x48] sm:$0xff]  ;;  %v701_v30 = vld [vmem:[#allocation7 + $0x40] sm:$0xff]  ;;  %v716_v31 = vld [vmem:[#allocation9 + $0x38] sm:$0xff] }
  0x23   :  { %v715_v32 = vld [vmem:[#allocation9 + $0x30] sm:$0xff]  ;;  %v128_v33 = vld [vmem:[#allocation6] sm:$0x3]  ;;  %v714_v56 = vld [vmem:[#allocation9 + $0x28] sm:$0xff] }
  0x24   :  { %v130_v34 = vperm.slane %v128_v33, 0  ;;  %v131_v35 = vperm.slane %v128_v33, 1  ;;  %v713_v57 = vld [vmem:[#allocation9 + $0x20] sm:$0xff]  ;;  %v712_v58 = vld [vmem:[#allocation9 + $0x18] sm:$0xff]  ;;  %v711_v59 = vld [vmem:[#allocation9 + $0x10] sm:$0xff] }
  0x25   :  { %167 = vmatpush.bf16.msra.mxu0 %v552_v15  ;;  %180 = vmatpush.bf16.msra.mxu1 %v556_v16  ;;  %v710_v60 = vld [vmem:[#allocation9 + $0x8] sm:$0xff]  ;;  %v709_v61 = vld [vmem:[#allocation9] sm:$0xff]  ;;  %v724_v62 = vld [vmem:[#allocation10 + $0x38] sm:$0xff] }
  0x26   :  { %336 = vmatpush.bf16.msra.mxu2 %v698_v18  ;;  %349 = vmatpush.bf16.msra.mxu3 %v706_v19  ;;  %v723_v63 = vld [vmem:[#allocation10 + $0x30] sm:$0xff]  ;;  %v735_v0 = vld [vmem:[%s994_s4] ss:$0 sm:$0xff]  ;;  %v722_v1 = vld [vmem:[#allocation10 + $0x28] sm:$0xff] }
  0x27   :  { %v721_v15 = vld [vmem:[#allocation10 + $0x20] sm:$0xff]  ;;  %v720_v16 = vld [vmem:[#allocation10 + $0x18] sm:$0xff]  ;;  %v719_v17 = vld [vmem:[#allocation10 + $0x10] sm:$0xff] }
  0x28   :  { %557 = vmatmul.msk.bf16.vlgmr.msra.gmra.mxu0 %vm149_vm1, %v124_v20  ;;  %558 = vmatmul.msk.bf16.vlgmr.msra.gmra.mxu1 %vm149_vm1, %v124_v20  ;;  %v718_v18 = vld [vmem:[#allocation10 + $0x8] sm:$0xff]  ;;  %v717_v19 = vld [vmem:[#allocation10] sm:$0xff]  ;;  %v736_v20 = vld [vmem:[%s996_s6] ss:$0 sm:$0xff] }
  0x29   :  { %436 = vmatpush.bf16.msrb.mxu0 %v716_v31  ;;  %525 = vmatpush.bf16.msrb.mxu1 %v724_v62  ;;  %v737_v31 = vld [vmem:[%s998_s8] ss:$0 sm:$0xff] }
  0x2a   :  { %337 = vmatpush.bf16.msra.mxu2 %v697_v21  ;;  %350 = vmatpush.bf16.msra.mxu3 %v705_v22 }
  0x2d   :  { %437 = vmatpush.bf16.msrb.mxu0 %v715_v32  ;;  %526 = vmatpush.bf16.msrb.mxu1 %v723_v63 }
  0x2e   :  { %338 = vmatpush.bf16.msra.mxu2 %v696_v23  ;;  %351 = vmatpush.bf16.msra.mxu3 %v704_v24 }
  0x31   :  { %438 = vmatpush.bf16.msrb.mxu0 %v714_v56  ;;  %527 = vmatpush.bf16.msrb.mxu1 %v722_v1 }
  0x32   :  { %339 = vmatpush.bf16.msra.mxu2 %v695_v25  ;;  %352 = vmatpush.bf16.msra.mxu3 %v703_v26 }
  0x35   :  { %439 = vmatpush.bf16.msrb.mxu0 %v713_v57  ;;  %528 = vmatpush.bf16.msrb.mxu1 %v721_v15 }
  0x36   :  { %340 = vmatpush.bf16.msra.mxu2 %v694_v27  ;;  %353 = vmatpush.bf16.msra.mxu3 %v702_v28 }
  0x39   :  { %440 = vmatpush.bf16.msrb.mxu0 %v712_v58  ;;  %529 = vmatpush.bf16.msrb.mxu1 %v720_v16 }
  0x3a   :  { %341 = vmatpush.bf16.msra.mxu2 %v693_v29  ;;  %354 = vmatpush.bf16.msra.mxu3 %v701_v30 }
  0x3d   :  { %441 = vmatpush.bf16.msrb.mxu0 %v711_v59  ;;  %530 = vmatpush.bf16.msrb.mxu1 %v719_v17 }
  0x41   :  { %442 = vmatpush.bf16.msrb.mxu0 %v710_v60  ;;  %531 = vmatpush.bf16.msrb.mxu1 %v718_v18 }
  0x45   :  { %443 = vmatpush.bf16.msrb.mxu0 %v709_v61  ;;  %532 = vmatpush.bf16.msrb.mxu1 %v717_v19 }
  0xa5   :  { %v169_v36 = vpop.f32.mrf.mxu0  ;;  %v182_v37 = vpop.f32.mrf.mxu1 }
  0xa6   :  { %v170_v38 = vadd.f32 %v169_v36, %v130_v34  ;;  %v183_v39 = vadd.f32 %v182_v37, %v131_v35 }
  0xa8   :  { %v186_v40 = vmin.f32 %v170_v38, 0.0  ;;  %v187_v41 = vmin.f32 %v183_v39, 0.0  ;;  %vm196_vm2 = vcmp.gt.f32.partialorder %v170_v38, 0.0  ;;  %vm197_vm3 = vcmp.gt.f32.partialorder %v183_v39, 0.0 }
  0xaa   :  { %v188_v42 = vmul.f32 1.442695, %v186_v40  ;;  %v190_v43 = vmul.f32 1.442695, %v187_v41 }
  0xac   :  { %738 = vpow2.f32 %v188_v42 }
  0xad   :  { %740 = vpow2.f32 %v190_v43  ;;  %v171_v44 = vpop.f32.mrf.mxu0  ;;  %v184_v45 = vpop.f32.mrf.mxu1 }
  0xb2   :  { %v739_v46 = vpop.eup %738 }
  0xb3   :  { %v741_v47 = vpop.eup %740  ;;  %v192_v48 = vmul.f32 1.6732632, %v739_v46 }
  0xb4   :  { %v193_v49 = vmul.f32 1.6732632, %v741_v47 }
  0xb5   :  { %v559_v50 = vadd.f32 -1.6732632, %v192_v48 }
  0xb6   :  { %v560_v51 = vadd.f32 -1.6732632, %v193_v49 }
  0xb7   :  { %v198_v52 = vsel %vm196_vm2, %v170_v38, %v559_v50 }
  0xb8   :  { %v200_v53 = vpack.c.bf16 %v198_v52, %v198_v52  ;;  %v199_v54 = vsel %vm197_vm3, %v183_v39, %v560_v51 }
  0xb9   :  { %v201_v55 = vpack.c.bf16 %v199_v54, %v199_v54 }
  0xba   :  { %342 = vmatmul.bf16.vlgmr.msra.gmra.mxu2 %v200_v53 }
  0xbb   :  { %355 = vmatmul.bf16.vlgmr.msra.gmra.mxu3 %v201_v55 }
 0x13d   :  { %v343_v2 = vpop.f32.mrf.mxu2 }
 0x13e   :  { %v344_v3 = vadd.f32 %v735_v0, %v343_v2  ;;  %v356_v4 = vpop.f32.mrf.mxu3 }
 0x140   :  { %v357_v5 = vadd.f32 %v356_v4, %v344_v3 }
 0x142   :  { %v360_v6 = vmin.f32 %v357_v5, 0.0  ;;  %vm365_vm4 = vcmp.gt.f32.partialorder %v357_v5, 0.0 }
 0x144   :  { %v361_v7 = vmul.f32 1.442695, %v360_v6 }
 0x145   :  { %v345_v8 = vpop.f32.mrf.mxu2 }
 0x146   :  { %742 = vpow2.f32 %v361_v7  ;;  %v358_v9 = vpop.f32.mrf.mxu3 }
 0x14c   :  { %v743_v10 = vpop.eup %742 }
 0x14d   :  { %v363_v11 = vmul.f32 1.6732632, %v743_v10 }
 0x14f   :  { %v625_v12 = vadd.f32 -1.6732632, %v363_v11 }
 0x151   :  { %v366_v13 = vsel %vm365_vm4, %v357_v5, %v625_v12 }
 0x152   :  { %v367_v14 = vpack.c.bf16 %v366_v13, %v366_v13 }
 0x154   :  { %444 = vmatmul.bf16.vlgmr.msrb.gmra.mxu0 %v367_v14 }
 0x1d1   :  { %v445_v21 = vpop.f32.mrf.mxu0 }
 0x1d2   :  { %v446_v22 = vadd.f32 %v736_v20, %v445_v21 }
 0x1d4   :  { %v449_v23 = vmin.f32 %v446_v22, 0.0  ;;  %vm454_vm5 = vcmp.gt.f32.partialorder %v446_v22, 0.0 }
 0x1d6   :  { %v450_v24 = vmul.f32 1.442695, %v449_v23 }
 0x1d8   :  { %744 = vpow2.f32 %v450_v24 }
 0x1d9   :  { %v447_v25 = vpop.f32.mrf.mxu0 }
 0x1de   :  { %v745_v26 = vpop.eup %744 }
 0x1df   :  { %v452_v27 = vmul.f32 1.6732632, %v745_v26 }
 0x1e1   :  { %v658_v28 = vadd.f32 -1.6732632, %v452_v27 }
 0x1e3   :  { %v455_v29 = vsel %vm454_vm5, %v446_v22, %v658_v28 }
 0x1e4   :  { %v456_v30 = vpack.c.bf16 %v455_v29, %v455_v29 }
 0x1e6   :  { %533 = vmatmul.bf16.vlgmr.msrb.gmra.mxu1 %v456_v30 }
 0x263   :  { %v534_v32 = vpop.f32.mrf.mxu1 }
 0x264   :  { %v535_v33 = vadd.f32 %v737_v31, %v534_v32 }
 0x266   :  { %746 = vtanh.f32 %v535_v33 }
 0x26b   :  { %v536_v34 = vpop.f32.mrf.mxu1 }
 0x26c   :  { %v747_v35 = vpop.eup %746 }
 0x26d   :  { %540 = vst.msk [vmem:[%s999_s9] sm:$0xff] %vm539_vm6, %v747_v35 }
 0x26e   :  { %545 = vsyncpa [#allocation3], 1 }
 0x26f   :  { %546 = vsyncpa [#allocation5], 1 }
 0x270   :  { %547 = vsyncpa [#allocation8], 1 }
 0x271   :  { %548 = vsyncpa [#allocation11], 1 }

</bundles_post_ra>
